<compile_context>
chip_gen: v5e
topology: v5e:2x2
jax: 0.10.0
libtpu: 0.0.40
codegen_flags: <defaults>
</compile_context>

<pallas_src>
import functools

import jax
import jax.numpy as jnp
from jax.experimental import pallas as pl
from jax.experimental.pallas import tpu as pltpu


def _round_up(x, m):
    return ((x + m - 1) // m) * m


def _detect_vmem_budget():
    """Per-generation cap for vmem_limit_bytes (stays below physical VMEM)."""
    try:
        cap = int(getattr(pltpu.get_tpu_info(), "vmem_capacity_bytes",
                          128 * 2 ** 20))
    except Exception:  # non-TPU tracing / older runtime: assume 128 MiB part
        cap = 128 * 2 ** 20
    if cap <= 64 * 2 ** 20:
        return 52 * 2 ** 20       # v7x-class (64 MiB/TC): keep real headroom
    return 100 * 2 ** 20          # v5e / v6e (128 MiB): scoped default is tiny


_VMEM_BUDGET = _detect_vmem_budget()
_TM_CANDIDATES = (1024, 512, 256, 128, 64, 32, 16)


def _vmem_need(tm, tk, d_in, xb, ob, wb, acc_in_out):
    need = (2 * tm * d_in * xb        # x tiles (double-buffered)
            + 2 * tm * d_in * ob      # out tiles
            + 2 * d_in * tk * wb      # W1^T chunks
            + 2 * tk * d_in * wb      # W2^T chunks
            + 4 * d_in * 4            # gamma / beta
            + tm * tk * 4)            # live f32 ReLU intermediate
    if not acc_in_out:
        need += tm * d_in * 4         # separate f32 accumulator scratch
    return need


def _choose_tiles(N, d_in, d_out, xb, ob, wb, acc_in_out):
    budget = _VMEM_BUDGET - 4 * 2 ** 20   # headroom for Mosaic internals

    # Hidden-dim chunk: full d_out first (weights DMA'd exactly once -- their
    # block index is constant over the whole grid), then 256-aligned slabs for
    # the 256x256 MXU (v6e/v7x); 128 only as a last resort (fine on v5e).
    tk_cands = [d_out]
    for c in (1024, 512, 256, 128):
        if c < d_out and d_out % c == 0:
            tk_cands.append(c)

    n_pad16 = _round_up(max(N, 1), 16)
    for tk in tk_cands:
        if tk == d_out and N > 16:
            # Weights grid-resident: keep >= 2 row tiles so both v7x TCs get
            # work (costs no extra weight traffic, only ~0.35us/step overhead).
            tm_limit = min(n_pad16, _round_up(-(-N // 2), 16))
        else:
            # Weights re-read once per row tile: maximize the row tile instead.
            tm_limit = n_pad16
        for tm in _TM_CANDIDATES:
            if tm > tm_limit:
                continue
            if _vmem_need(tm, tk, d_in, xb, ob, wb, acc_in_out) <= budget:
                return tm, tk
    return 16, tk_cands[-1]   # last resort for extreme shapes


def _ffn_body(x_ref, w1_ref, w2_ref, gamma_ref, beta_ref, o_ref, acc_ref):
    # x_ref:  (tm, d_in)   native dtype
    # w1_ref: (d_in, tk)   native dtype (chunk of W1^T)
    # w2_ref: (tk, d_in)   native dtype (chunk of W2^T)
    # acc_ref:(tm, d_in)   f32 accumulator (separate scratch, or o_ref itself
    #                       when the output dtype is f32)
    k = pl.program_id(1)

    @pl.when(k == 0)
    def _():
        acc_ref[...] = jnp.zeros_like(acc_ref)

    # Linear -> ReLU -> Linear over one d_out chunk.  Operands hit the MXU in
    # their native dtype; accumulation is f32.
    h = jnp.dot(x_ref[...], w1_ref[...], preferred_element_type=jnp.float32)
    h = jnp.maximum(h, 0.0)
    acc_ref[...] += jnp.dot(h.astype(w2_ref.dtype), w2_ref[...],
                            preferred_element_type=jnp.float32)

    @pl.when(k == pl.num_programs(1) - 1)
    def _():
        # dropout (eval mode) == identity; residual add + LayerNorm in f32.
        z = x_ref[...].astype(jnp.float32) + acc_ref[...]
        mean = jnp.mean(z, axis=-1, keepdims=True)
        var = jnp.mean(z * z, axis=-1, keepdims=True) - mean * mean
        zn = (z - mean) * jax.lax.rsqrt(var + 1e-6)
        out = (zn * gamma_ref[...].astype(jnp.float32)
               + beta_ref[...].astype(jnp.float32))
        o_ref[...] = out.astype(o_ref.dtype)


def _ffn_kernel_scratch(x_ref, w1_ref, w2_ref, g_ref, b_ref, o_ref, acc_ref):
    _ffn_body(x_ref, w1_ref, w2_ref, g_ref, b_ref, o_ref, acc_ref)


def _ffn_kernel_inplace(x_ref, w1_ref, w2_ref, g_ref, b_ref, o_ref):
    # f32 output block stays VMEM-resident across k -> use it as accumulator.
    _ffn_body(x_ref, w1_ref, w2_ref, g_ref, b_ref, o_ref, o_ref)


@functools.partial(jax.jit, static_argnames=("tm", "tk", "compute_dtype"))
def feed_forward(x, w1, w2, gamma, beta, *, tm=None, tk=None,
                 compute_dtype=None):
    """x: (B, S, d_in); w1: (d_out, d_in); w2: (d_in, d_out) [PyTorch layout]."""
    out_dtype = x.dtype
    B, S, d_in = x.shape
    d_out = w1.shape[0]
    N = B * S

    # Optional low-precision feed for the MXU (accumulation / LN stay f32).
    if compute_dtype is not None:
        x = x.astype(compute_dtype)
        w1 = w1.astype(compute_dtype)
        w2 = w2.astype(compute_dtype)

    xb = jnp.dtype(x.dtype).itemsize
    wb = jnp.dtype(w1.dtype).itemsize
    ob = jnp.dtype(out_dtype).itemsize
    acc_in_out = jnp.dtype(out_dtype) == jnp.dtype(jnp.float32)

    auto_tm, auto_tk = _choose_tiles(N, d_in, d_out, xb, ob, wb, acc_in_out)
    tm = auto_tm if tm is None else min(tm, _round_up(N, 16))
    tk = auto_tk if tk is None else tk
    if tk != d_out:
        assert d_out % tk == 0 and tk % 128 == 0, "tk must tile d_out in 128s"

    n_pad = _round_up(N, tm)
    x2 = x.reshape(N, d_in)
    if n_pad != N:
        x2 = jnp.pad(x2, ((0, n_pad - N), (0, 0)))

    w1_t = w1.T                     # (d_in, d_out):  h = x2 @ W1^T
    w2_t = w2.T                     # (d_out, d_in)
    gamma2 = gamma.reshape(1, d_in)
    beta2 = beta.reshape(1, d_in)

    grid = (n_pad // tm, d_out // tk)
    n_row_tiles = grid[0]

    need = _vmem_need(tm, tk, d_in, xb, ob, wb, acc_in_out)
    vmem_limit = int(min(_VMEM_BUDGET, max(16 * 2 ** 20, need + 4 * 2 ** 20)))

    # Weight chunks are re-fetched once per row tile only when tk < d_out.
    weight_fetches = 1 if tk == d_out else n_row_tiles
    cost = pl.CostEstimate(
        flops=4 * n_pad * d_in * d_out,           # two matmuls
        transcendentals=n_pad,                    # rsqrt per row
        bytes_accessed=(n_pad * d_in * (xb + ob)  # x read + out write
                        + weight_fetches * 2 * d_in * d_out * wb
                        + 2 * d_in * 4),          # gamma/beta
    )

    if acc_in_out:
        kernel, scratch = _ffn_kernel_inplace, []
    else:
        kernel = _ffn_kernel_scratch
        scratch = [pltpu.VMEM((tm, d_in), jnp.float32)]

    out = pl.pallas_call(
        kernel,
        out_shape=jax.ShapeDtypeStruct((n_pad, d_in), out_dtype),
        grid_spec=pltpu.PrefetchScalarGridSpec(
            num_scalar_prefetch=0,
            grid=grid,
            in_specs=[
                pl.BlockSpec((tm, d_in), lambda i, k: (i, 0)),     # x
                pl.BlockSpec((d_in, tk), lambda i, k: (0, k)),     # W1^T chunk
                pl.BlockSpec((tk, d_in), lambda i, k: (k, 0)),     # W2^T chunk
                pl.BlockSpec((1, d_in), lambda i, k: (0, 0)),      # gamma
                pl.BlockSpec((1, d_in), lambda i, k: (0, 0)),      # beta
            ],
            out_specs=pl.BlockSpec((tm, d_in), lambda i, k: (i, 0)),
            scratch_shapes=scratch,
        ),
        compiler_params=pltpu.CompilerParams(
            dimension_semantics=("parallel", "arbitrary"),
            vmem_limit_bytes=vmem_limit,
        ),
        cost_estimate=cost,
    )(x2, w1_t, w2_t, gamma2, beta2)

    return out[:N].reshape(B, S, d_in)


def ref_feed_forward(x, w1, w2, gamma, beta):
    """Pure-JAX reference mirroring the PyTorch module (eval mode)."""
    y = jnp.maximum(x @ w1.T, 0.0) @ w2.T
    z = x + y
    mean = jnp.mean(z, axis=-1, keepdims=True)
    var = jnp.mean((z - mean) ** 2, axis=-1, keepdims=True)
    return (z - mean) * jax.lax.rsqrt(var + 1e-6) * gamma + beta


if __name__ == "__main__":
    # Small but lane-dense shapes (d_in/d_out multiples of 128).  With the
    # default heuristics this picks tk == d_out (weights fetched exactly once)
    # and two row tiles, exercising both the reduction init/finalize and the
    # parallel row axis.
    B, S, d_in, d_out = 2, 128, 128, 256

    key = jax.random.PRNGKey(0)
    kx, k1, k2, kg, kb = jax.random.split(key, 5)

    x = jax.random.normal(kx, (B, S, d_in), dtype=jnp.float32)
    # Linear weights in PyTorch layout (out_features, in_features).
    w1 = jax.random.normal(k1, (d_out, d_in), dtype=jnp.float32) / d_in ** 0.5
    w2 = jax.random.normal(k2, (d_in, d_out), dtype=jnp.float32) / d_out ** 0.5
    gamma = 1.0 + 0.1 * jax.random.normal(kg, (d_in,), dtype=jnp.float32)
    beta = 0.1 * jax.random.normal(kb, (d_in,), dtype=jnp.float32)

    out = feed_forward(x, w1, w2, gamma, beta)
    jax.block_until_ready(out)

    ref = ref_feed_forward(x, w1, w2, gamma, beta)
    assert out.shape == (B, S, d_in)
    assert jnp.allclose(out, ref, atol=2e-4, rtol=2e-4), float(
        jnp.max(jnp.abs(out - ref)))

    print("KERNEL_OK")
</pallas_src>

<mosaic_0001>
module attributes {stable_mosaic.version = 11 : i64} {
  func.func @_ffn_kernel_inplace(%arg0: i32, %arg1: i32, %arg2: memref<128x128xf32, #tpu.memory_space<vmem>>, %arg3: memref<128x256xf32, #tpu.memory_space<vmem>>, %arg4: memref<256x128xf32, #tpu.memory_space<vmem>>, %arg5: memref<1x128xf32, #tpu.memory_space<vmem>>, %arg6: memref<1x128xf32, #tpu.memory_space<vmem>>, %arg7: memref<128x128xf32, #tpu.memory_space<vmem>>) attributes {dimension_semantics = [#tpu.dimension_semantics<parallel>, #tpu.dimension_semantics<arbitrary>], iteration_bounds = array<i64: 2, 1>, scalar_prefetch = 0 : i64, scratch_operands = 0 : i64, tpu.core_type = #tpu.core_type<tc>, window_params = [{transform_indices = @transform_0, window_bounds = array<i64: 128, 128>}, {transform_indices = @transform_1, window_bounds = array<i64: 128, 256>}, {transform_indices = @transform_2, window_bounds = array<i64: 256, 128>}, {pipeline_mode = #tpu.pipeline_mode<synchronous>, transform_indices = @transform_3, window_bounds = array<i64: 1, 128>}, {pipeline_mode = #tpu.pipeline_mode<synchronous>, transform_indices = @transform_4, window_bounds = array<i64: 1, 128>}, {transform_indices = @transform_5, window_bounds = array<i64: 128, 128>}]} {
    %c0_i32 = arith.constant 0 : i32
    %0 = arith.cmpi eq, %arg1, %c0_i32 : i32
    %1 = arith.extui %0 : i1 to i32
    %c0_i32_0 = arith.constant 0 : i32
    %2 = arith.cmpi ne, %1, %c0_i32_0 : i32
    scf.if %2 {
      %cst_14 = arith.constant 0.000000e+00 : f32
      %16 = vector.broadcast %cst_14 : f32 to vector<128x128xf32>
      %c0_15 = arith.constant 0 : index
      %c0_16 = arith.constant 0 : index
      %17 = vector.load %arg7[%c0_15, %c0_16] : memref<128x128xf32, #tpu.memory_space<vmem>>, vector<128x128xf32>
      tpu.vector_store %arg7[%c0_15, %c0_16], %16 {strides = array<i32>} : memref<128x128xf32, #tpu.memory_space<vmem>>, vector<128x128xf32>,
    } else {
    }
    %c0 = arith.constant 0 : index
    %c0_1 = arith.constant 0 : index
    %3 = vector.load %arg2[%c0, %c0_1] : memref<128x128xf32, #tpu.memory_space<vmem>>, vector<128x128xf32>
    %c0_2 = arith.constant 0 : index
    %c0_3 = arith.constant 0 : index
    %4 = vector.load %arg3[%c0_2, %c0_3] : memref<128x256xf32, #tpu.memory_space<vmem>>, vector<128x256xf32>
    %cst = arith.constant dense<0.000000e+00> : vector<128x256xf32>
    %5 = tpu.matmul %3, %4, %cst {dimension_numbers = #tpu.dot_dimension_numbers<[1], [0], [0], [1], [0, 0, 1, 1], [], []>} : vector<128x128xf32>, vector<128x256xf32>, vector<128x256xf32> -> vector<128x256xf32>
    %cst_4 = arith.constant 0.000000e+00 : f32
    %6 = vector.broadcast %cst_4 : f32 to vector<128x256xf32>
    %7 = arith.maximumf %5, %6 : vector<128x256xf32>
    %c0_5 = arith.constant 0 : index
    %c0_6 = arith.constant 0 : index
    %8 = vector.load %arg7[%c0_5, %c0_6] : memref<128x128xf32, #tpu.memory_space<vmem>>, vector<128x128xf32>
    %c0_7 = arith.constant 0 : index
    %c0_8 = arith.constant 0 : index
    %9 = vector.load %arg4[%c0_7, %c0_8] : memref<256x128xf32, #tpu.memory_space<vmem>>, vector<256x128xf32>
    %cst_9 = arith.constant dense<0.000000e+00> : vector<128x128xf32>
    %10 = tpu.matmul %7, %9, %cst_9 {dimension_numbers = #tpu.dot_dimension_numbers<[1], [0], [0], [1], [0, 0, 1, 1], [], []>} : vector<128x256xf32>, vector<256x128xf32>, vector<128x128xf32> -> vector<128x128xf32>
    %11 = arith.addf %8, %10 : vector<128x128xf32>
    %c0_10 = arith.constant 0 : index
    %c0_11 = arith.constant 0 : index
    %12 = vector.load %arg7[%c0_10, %c0_11] : memref<128x128xf32, #tpu.memory_space<vmem>>, vector<128x128xf32>
    tpu.vector_store %arg7[%c0_10, %c0_11], %11 {strides = array<i32>} : memref<128x128xf32, #tpu.memory_space<vmem>>, vector<128x128xf32>,
    %c0_i32_12 = arith.constant 0 : i32
    %13 = arith.cmpi eq, %arg1, %c0_i32_12 : i32
    %14 = arith.extui %13 : i1 to i32
    %c0_i32_13 = arith.constant 0 : i32
    %15 = arith.cmpi ne, %14, %c0_i32_13 : i32
    scf.if %15 {
      %c0_14 = arith.constant 0 : index
      %c0_15 = arith.constant 0 : index
      %16 = vector.load %arg2[%c0_14, %c0_15] : memref<128x128xf32, #tpu.memory_space<vmem>>, vector<128x128xf32>
      %c0_16 = arith.constant 0 : index
      %c0_17 = arith.constant 0 : index
      %17 = vector.load %arg7[%c0_16, %c0_17] : memref<128x128xf32, #tpu.memory_space<vmem>>, vector<128x128xf32>
      %18 = arith.addf %16, %17 : vector<128x128xf32>
      %cst_18 = arith.constant dense<0.000000e+00> : vector<128xf32>
      %19 = vector.multi_reduction <add>, %18, %cst_18 [1] : vector<128x128xf32> to vector<128xf32>
      %20 = vector.shape_cast %19 : vector<128xf32> to vector<128x1xf32>
      %cst_19 = arith.constant 1.280000e+02 : f32
      %21 = vector.broadcast %cst_19 : f32 to vector<128x1xf32>
      %22 = arith.divf %20, %21 : vector<128x1xf32>
      %23 = arith.mulf %18, %18 : vector<128x128xf32>
      %cst_20 = arith.constant dense<0.000000e+00> : vector<128xf32>
      %24 = vector.multi_reduction <add>, %23, %cst_20 [1] : vector<128x128xf32> to vector<128xf32>
      %25 = vector.shape_cast %24 : vector<128xf32> to vector<128x1xf32>
      %cst_21 = arith.constant 1.280000e+02 : f32
      %26 = vector.broadcast %cst_21 : f32 to vector<128x1xf32>
      %27 = arith.divf %25, %26 : vector<128x1xf32>
      %28 = arith.mulf %22, %22 : vector<128x1xf32>
      %29 = arith.subf %27, %28 : vector<128x1xf32>
      %30 = vector.broadcast %22 : vector<128x1xf32> to vector<128x128xf32>
      %31 = arith.subf %18, %30 : vector<128x128xf32>
      %cst_22 = arith.constant 9.99999997E-7 : f32
      %32 = vector.broadcast %cst_22 : f32 to vector<128x1xf32>
      %33 = arith.addf %29, %32 : vector<128x1xf32>
      %34 = math.rsqrt %33 : vector<128x1xf32>
      %35 = vector.broadcast %34 : vector<128x1xf32> to vector<128x128xf32>
      %36 = arith.mulf %31, %35 : vector<128x128xf32>
      %c0_23 = arith.constant 0 : index
      %c0_24 = arith.constant 0 : index
      %37 = vector.load %arg5[%c0_23, %c0_24] : memref<1x128xf32, #tpu.memory_space<vmem>>, vector<1x128xf32>
      %38 = vector.broadcast %37 : vector<1x128xf32> to vector<128x128xf32>
      %39 = arith.mulf %36, %38 : vector<128x128xf32>
      %c0_25 = arith.constant 0 : index
      %c0_26 = arith.constant 0 : index
      %40 = vector.load %arg6[%c0_25, %c0_26] : memref<1x128xf32, #tpu.memory_space<vmem>>, vector<1x128xf32>
      %41 = vector.broadcast %40 : vector<1x128xf32> to vector<128x128xf32>
      %42 = arith.addf %39, %41 : vector<128x128xf32>
      %c0_27 = arith.constant 0 : index
      %c0_28 = arith.constant 0 : index
      %43 = vector.load %arg7[%c0_27, %c0_28] : memref<128x128xf32, #tpu.memory_space<vmem>>, vector<128x128xf32>
      tpu.vector_store %arg7[%c0_27, %c0_28], %42 {strides = array<i32>} : memref<128x128xf32, #tpu.memory_space<vmem>>, vector<128x128xf32>,
    } else {
    }
    return
  }
  func.func @transform_0(%arg0: i32, %arg1: i32) -> (i32, i32) {
    %c0_i32 = arith.constant 0 : i32
    %c0_i32_0 = arith.constant 0 : i32
    return %arg0, %c0_i32 : i32, i32
  }
  func.func @transform_1(%arg0: i32, %arg1: i32) -> (i32, i32) {
    %c0_i32 = arith.constant 0 : i32
    %c0_i32_0 = arith.constant 0 : i32
    return %c0_i32, %arg1 : i32, i32
  }
  func.func @transform_2(%arg0: i32, %arg1: i32) -> (i32, i32) {
    %c0_i32 = arith.constant 0 : i32
    %c0_i32_0 = arith.constant 0 : i32
    return %arg1, %c0_i32 : i32, i32
  }
  func.func @transform_3(%arg0: i32, %arg1: i32) -> (i32, i32) {
    %c0_i32 = arith.constant 0 : i32
    %c0_i32_0 = arith.constant 0 : i32
    %c0_i32_1 = arith.constant 0 : i32
    return %c0_i32, %c0_i32_0 : i32, i32
  }
  func.func @transform_4(%arg0: i32, %arg1: i32) -> (i32, i32) {
    %c0_i32 = arith.constant 0 : i32
    %c0_i32_0 = arith.constant 0 : i32
    %c0_i32_1 = arith.constant 0 : i32
    return %c0_i32, %c0_i32_0 : i32, i32
  }
  func.func @transform_5(%arg0: i32, %arg1: i32) -> (i32, i32) {
    %c0_i32 = arith.constant 0 : i32
    %c0_i32_0 = arith.constant 0 : i32
    return %arg0, %c0_i32 : i32, i32
  }
}

</mosaic_0001>

<bundles_post_ra>
// kernel: feed_forward.1
= control target key start
LH: loop header
LB: loop body
LE: loop exit
PB: predicated region body
PF: predicated region fallthrough
CT: control target
= control target key end

     0   :  { %10 = vsyncpa [#allocation3], 0  ;;  %s2164_s0 = inlined_call_operand.vmem [shape: f32[256,128], index: 0, kind: input, shape index: {}]   ;;  %s2165_s1 = inlined_call_operand.vmem [shape: f32[128,256], index: 1, kind: input, shape index: {}]   ;;  %s2166_s2 = inlined_call_operand.vmem [shape: f32[256,128], index: 2, kind: input, shape index: {}]   ;;  %s2167_s3 = inlined_call_operand.vmem [shape: f32[1,128], index: 3, kind: input, shape index: {}]   ;;  %s2168_s4 = inlined_call_operand.vmem [shape: f32[1,128], index: 4, kind: input, shape index: {}]   ;;  %s2169_s5 = inlined_call_operand.hbm [shape: f32[256,128], index: 5, kind: output, shape index: {}]  }
   0x1   :  { %12 = vsyncpa [#allocation3 + $0x1], 0  ;;  %s1528_s18 = smov 0   ;;  %s1530_s19 = smov 0  }
   0x2   :  { %s1532_s20 = smov 0   ;;  %s1534_s21 = smov 0  }
   0x3   :  { %s1536_s22 = smov 0   ;;  %s1538_s23 = smov 0  }
   0x4 LB: > { %s1304_s24 = sadd.s32 4294967295, %s1493_s23   ;;  %s1305_s25 = sadd.s32 4294967294, %s1493_s23   ;;  %s1493_s23 = sphi %s1538_s23, %s18_s23   ;;  %s1489_s22 = sphi %s1536_s22, %s2176_s22   ;;  %s1485_s21 = sphi %s1534_s21, %s2175_s21   ;;  %s1481_s20 = sphi %s1532_s20, %s2174_s20   ;;  %s1477_s19 = sphi %s1530_s19, %s2173_s19   ;;  %s1473_s18 = sphi %s1528_s18, %s2172_s18  }
   0x5   : > { %s30_s26 = sadd.s32 1, %s1489_s22  ;;  %s157_s27 = sadd.s32 1, %s1481_s20 }
   0x6   : > { %p32_p0 = scmp.ge.s32.totalorder %s30_s26, 2  ;;  %p167_p1 = scmp.ne.s32.totalorder %s1481_s20, %s1477_s19 }
   0x7   : > { %p168_p2 = scmp.eq.s32.totalorder %s1304_s24, 1  ;;  %p173_p3 = scmp.ne.s32.totalorder %s1477_s19, %s1473_s18 }
   0x8   : > { %s2178_s26 = smov (%p32_p0, %s30_s26), 0  ;;  %p174_p5 = scmp.eq.s32.totalorder %s1305_s25, 1 }
   0x9   : > { %p1568_p4 = por %p168_p2, %p167_p1  ;;  %s154_s29 = ssub.s32 %s1489_s22, %s2178_s26 }
   0xa   : > { %p1310_p6 = scmp.ge.s32.totalorder %s1493_s23, 1  ;;  %p155_p7 = scmp.eq.s32.totalorder %s154_s29, 0 }
   0xb   : > { %p1575_p8 = por %p174_p5, %p173_p3  ;;  %p225_p9 = scmp.lt.s32.totalorder %s1493_s23, 3 }
   0xc   : > { %s1581_s6 = scalar_select %p155_p7, %s1481_s20, %s157_s27  }
   0xd   : > { %p226_p10 = pnand %p1310_p6, %p225_p9 }
   0xe   : > { %s1312_s9 = sshll.u32 (!%p226_p10), %s1485_s21, 4 }
   0xf   : > { %229 = sbr.rel (%p226_p10) target bundleno = 594 (0x252), region = 40  ;;  %p264_p11 = scmp.lt.s32.totalorder (!%p226_p10), %s1312_s9, 31 }
  0x14   : > { %v348_v0 = vld [vmem:[%s2165_s1 + $0xf0] sm:$0xff]  ;;  %v349_v1 = vld [vmem:[%s2165_s1 + $0xf8] sm:$0xff]  ;;  %v346_v2 = vld [vmem:[%s2165_s1 + $0xe0] sm:$0xff]  ;;  %s2180_s9 = smov (!%p264_p11, %s1312_s9), 31 }
  0x15   : > { %350 = vmatpush.msra.mxu0 %v348_v0  ;;  %415 = vmatpush.msra.mxu1 %v349_v1  ;;  %v347_v3 = vld [vmem:[%s2165_s1 + $0xe8] sm:$0xff]  ;;  %v344_v4 = vld [vmem:[%s2165_s1 + $0xd0] sm:$0xff]  ;;  %v345_v5 = vld [vmem:[%s2165_s1 + $0xd8] sm:$0xff]  ;;  %s1313_s16 = sshll.u32 %s2180_s9, 3 }
  0x16   : > { %v342_v6 = vld [vmem:[%s2165_s1 + $0xc0] sm:$0xff]  ;;  %v343_v7 = vld [vmem:[%s2165_s1 + $0xc8] sm:$0xff]  ;;  %v340_v8 = vld [vmem:[%s2165_s1 + $0xb0] sm:$0xff]  ;;  %s1677_s12 = scalar_lea.vmem %s2164_s0, %s1313_s16  ;;  %s1319_s16 = sshll.u32 %s1485_s21, 7 }
  0x17   : > { %351 = vmatpush.msra.mxu0 %v346_v2  ;;  %416 = vmatpush.msra.mxu1 %v347_v3  ;;  %v341_v9 = vld [vmem:[%s2165_s1 + $0xb8] sm:$0xff]  ;;  %v338_v10 = vld [vmem:[%s2165_s1 + $0xa0] sm:$0xff]  ;;  %v339_v11 = vld [vmem:[%s2165_s1 + $0xa8] sm:$0xff]  ;;  %s1200_s27 = scalar_lea.hbm %s2169_s5, %s1319_s16 }
  0x18   : > { %v336_v12 = vld [vmem:[%s2165_s1 + $0x90] sm:$0xff]  ;;  %v337_v13 = vld [vmem:[%s2165_s1 + $0x98] sm:$0xff]  ;;  %v334_v14 = vld [vmem:[%s2165_s1 + $0x80] sm:$0xff]  ;;  %s1203_s29 = sshll.u32 %s1200_s27, 4  ;;  %s1204_s29 = int_to_ptr.hbm [resolvable:$true] %s1203_s29 }
  0x19   : > { %352 = vmatpush.msra.mxu0 %v344_v4  ;;  %417 = vmatpush.msra.mxu1 %v345_v5  ;;  %v335_v15 = vld [vmem:[%s2165_s1 + $0x88] sm:$0xff]  ;;  %v332_v16 = vld [vmem:[%s2165_s1 + $0x70] sm:$0xff]  ;;  %v333_v17 = vld [vmem:[%s2165_s1 + $0x78] sm:$0xff]  ;;  %s1429_s8 = sshra.s32 %s1204_s29, 4  ;;  %s1430_s8 = int_to_ptr.hbm [resolvable:$true] %s1429_s8 }
  0x1a   : > { %v330_v18 = vld [vmem:[%s2165_s1 + $0x60] sm:$0xff]  ;;  %v331_v19 = vld [vmem:[%s2165_s1 + $0x68] sm:$0xff]  ;;  %v328_v20 = vld [vmem:[%s2165_s1 + $0x50] sm:$0xff]  ;;  %s1431_s10 = scalar_lea.hbm %s1430_s8, 128  ;;  %p1436_p1 = scmp.lt.s32.totalorder %s1430_s8, %s2169_s5 }
  0x1b   : > { %353 = vmatpush.msra.mxu0 %v342_v6  ;;  %418 = vmatpush.msra.mxu1 %v343_v7  ;;  %v329_v21 = vld [vmem:[%s2165_s1 + $0x58] sm:$0xff]  ;;  %v326_v22 = vld [vmem:[%s2165_s1 + $0x40] sm:$0xff]  ;;  %v327_v23 = vld [vmem:[%s2165_s1 + $0x48] sm:$0xff]  ;;  %p1432_p12 = scmp.ne.s32.totalorder %s1430_s8, %s1431_s10 }
  0x1c   : > { %v324_v24 = vld [vmem:[%s2165_s1 + $0x30] sm:$0xff]  ;;  %v325_v25 = vld [vmem:[%s2165_s1 + $0x38] sm:$0xff]  ;;  %v322_v26 = vld [vmem:[%s2165_s1 + $0x20] sm:$0xff] }
  0x1d   : > { %354 = vmatpush.msra.mxu0 %v340_v8  ;;  %419 = vmatpush.msra.mxu1 %v341_v9  ;;  %v323_v27 = vld [vmem:[%s2165_s1 + $0x28] sm:$0xff]  ;;  %v320_v28 = vld [vmem:[%s2165_s1 + $0x10] sm:$0xff]  ;;  %v321_v29 = vld [vmem:[%s2165_s1 + $0x18] sm:$0xff]  ;;  %p1433_p13 = pnand %p1432_p12, %p1568_p4 }
  0x1e   : > { %v318_v30 = vld [vmem:[%s2165_s1] sm:$0xff]  ;;  %v319_v31 = vld [vmem:[%s2165_s1 + $0x8] sm:$0xff]  ;;  %v1696_v34 = vld [vmem:[%s1677_s12 + $0x10] sm:$0xff] }
  0x1f   : > { %355 = vmatpush.msra.mxu0 %v338_v10  ;;  %420 = vmatpush.msra.mxu1 %v339_v11  ;;  %v1686_v32 = vld [vmem:[%s1677_s12] sm:$0xff]  ;;  %v1691_v33 = vld [vmem:[%s1677_s12 + $0x8] sm:$0xff]  ;;  %v1701_v35 = vld [vmem:[%s1677_s12 + $0x18] sm:$0xff]  ;;  %p1434_p0 = pneg %p1433_p13 }
  0x20   : > { %v1706_v36 = vld [vmem:[%s1677_s12 + $0x20] sm:$0xff]  ;;  %v1711_v37 = vld [vmem:[%s1677_s12 + $0x28] sm:$0xff]  ;;  %v1716_v38 = vld [vmem:[%s1677_s12 + $0x30] sm:$0xff] }
  0x21   : > { %356 = vmatpush.msra.mxu0 %v336_v12  ;;  %421 = vmatpush.msra.mxu1 %v337_v13  ;;  %v1721_v39 = vld [vmem:[%s1677_s12 + $0x38] sm:$0xff]  ;;  %v1726_v40 = vld [vmem:[%s1677_s12 + $0x40] sm:$0xff]  ;;  %v542_v43 = vld [vmem:[%s2166_s2 + $0x70] sm:$0xff] }
  0x22   : > { %v543_v41 = vld [vmem:[%s2166_s2 + $0x78] sm:$0xff]  ;;  %v558_v44 = vld [vmem:[%s2166_s2 + $0xf0] sm:$0xff]  ;;  %v541_v45 = vld [vmem:[%s2166_s2 + $0x68] sm:$0xff] }
  0x23   : > { %357 = vmatpush.msra.mxu0 %v334_v14  ;;  %422 = vmatpush.msra.mxu1 %v335_v15  ;;  %v559_v42 = vld [vmem:[%s2166_s2 + $0xf8] sm:$0xff]  ;;  %v557_v46 = vld [vmem:[%s2166_s2 + $0xe8] sm:$0xff]  ;;  %v540_v47 = vld [vmem:[%s2166_s2 + $0x60] sm:$0xff] }
  0x24   : > { %560 = vmatpush.msra.mxu2 %v543_v41  ;;  %625 = vmatpush.msra.mxu3 %v559_v42  ;;  %v556_v48 = vld [vmem:[%s2166_s2 + $0xe0] sm:$0xff]  ;;  %v1755_v49 = vld [vmem:[%s1677_s12 + $0x48] sm:$0xff]  ;;  %v539_v50 = vld [vmem:[%s2166_s2 + $0x58] sm:$0xff] }
  0x25   : > { %358 = vmatpush.msra.mxu0 %v332_v16  ;;  %423 = vmatpush.msra.mxu1 %v333_v17  ;;  %v555_v51 = vld [vmem:[%s2166_s2 + $0xd8] sm:$0xff]  ;;  %v538_v52 = vld [vmem:[%s2166_s2 + $0x50] sm:$0xff]  ;;  %v537_v54 = vld [vmem:[%s2166_s2 + $0x48] sm:$0xff] }
  0x26   : > { %561 = vmatpush.msra.mxu2 %v542_v43  ;;  %626 = vmatpush.msra.mxu3 %v558_v44  ;;  %v554_v53 = vld [vmem:[%s2166_s2 + $0xd0] sm:$0xff]  ;;  %v553_v55 = vld [vmem:[%s2166_s2 + $0xc8] sm:$0xff]  ;;  %v536_v56 = vld [vmem:[%s2166_s2 + $0x40] sm:$0xff] }
  0x27   : > { %359 = vmatpush.msra.mxu0 %v330_v18  ;;  %424 = vmatpush.msra.mxu1 %v331_v19  ;;  %v552_v57 = vld [vmem:[%s2166_s2 + $0xc0] sm:$0xff]  ;;  %v1784_v58 = vld [vmem:[%s1677_s12 + $0x50] sm:$0xff]  ;;  %v535_v59 = vld [vmem:[%s2166_s2 + $0x38] sm:$0xff] }
  0x28   : > { %562 = vmatpush.msra.mxu2 %v541_v45  ;;  %627 = vmatpush.msra.mxu3 %v557_v46  ;;  %v551_v60 = vld [vmem:[%s2166_s2 + $0xb8] sm:$0xff]  ;;  %v534_v61 = vld [vmem:[%s2166_s2 + $0x30] sm:$0xff]  ;;  %v533_v63 = vld [vmem:[%s2166_s2 + $0x28] sm:$0xff] }
  0x29   : > { %360 = vmatpush.msra.mxu0 %v328_v20  ;;  %425 = vmatpush.msra.mxu1 %v329_v21  ;;  %v550_v62 = vld [vmem:[%s2166_s2 + $0xb0] sm:$0xff]  ;;  %v549_v0 = vld [vmem:[%s2166_s2 + $0xa8] sm:$0xff]  ;;  %v532_v1 = vld [vmem:[%s2166_s2 + $0x20] sm:$0xff] }
  0x2a   : > { %563 = vmatpush.msra.mxu2 %v540_v47  ;;  %628 = vmatpush.msra.mxu3 %v556_v48  ;;  %v548_v2 = vld [vmem:[%s2166_s2 + $0xa0] sm:$0xff]  ;;  %v1813_v3 = vld [vmem:[%s1677_s12 + $0x58] sm:$0xff]  ;;  %v530_v6 = vld [vmem:[%s2166_s2 + $0x10] sm:$0xff] }
  0x2b   : > { %361 = vmatpush.msra.mxu0 %v326_v22  ;;  %426 = vmatpush.msra.mxu1 %v327_v23  ;;  %v531_v4 = vld [vmem:[%s2166_s2 + $0x18] sm:$0xff]  ;;  %v546_v7 = vld [vmem:[%s2166_s2 + $0x90] sm:$0xff]  ;;  %v529_v8 = vld [vmem:[%s2166_s2 + $0x8] sm:$0xff] }
  0x2c   : > { %564 = vmatpush.msra.mxu2 %v539_v50  ;;  %629 = vmatpush.msra.mxu3 %v555_v51  ;;  %v547_v5 = vld [vmem:[%s2166_s2 + $0x98] sm:$0xff]  ;;  %v545_v9 = vld [vmem:[%s2166_s2 + $0x88] sm:$0xff]  ;;  %v1836_v10 = vld [vmem:[%s1677_s12 + $0x60] sm:$0xff] }
  0x2d   : > { %362 = vmatpush.msra.mxu0 %v324_v24  ;;  %427 = vmatpush.msra.mxu1 %v325_v25  ;;  %v528_v11 = vld [vmem:[%s2166_s2] sm:$0xff]  ;;  %v1847_v13 = vld [vmem:[%s1677_s12 + $0x68] sm:$0xff]  ;;  %v1852_v14 = vld [vmem:[%s1677_s12 + $0x70] sm:$0xff] }
  0x2e   : > { %565 = vmatpush.msra.mxu2 %v538_v52  ;;  %630 = vmatpush.msra.mxu3 %v554_v53  ;;  %v544_v12 = vld [vmem:[%s2166_s2 + $0x80] sm:$0xff]  ;;  %v1857_v15 = vld [vmem:[%s1677_s12 + $0x78] sm:$0xff]  ;;  %s260_s12 = sand.u32 1, %s1477_s19  }
  0x2f   : > { %363 = vmatpush.msra.mxu0 %v322_v26  ;;  %428 = vmatpush.msra.mxu1 %v323_v27  ;;  %s1311_s13 = sshll.u32 %s260_s12, 7  ;;  %s1189_s7 = scalar_lea.sflag [#allocation3], %s260_s12 }
  0x30   : > { %566 = vmatpush.msra.mxu2 %v537_v54  ;;  %631 = vmatpush.msra.mxu3 %v553_v55  ;;  %s1988_s17 = scalar_lea.vmem [#allocation2], %s1311_s13  ;;  %s1435_s13 = scalar_lea.hbm %s2169_s5, 256 }
  0x31   : > { %364 = vmatpush.msra.mxu0 %v320_v28  ;;  %429 = vmatpush.msra.mxu1 %v321_v29  ;;  %s1201_s21 = sshll.u32 %s1988_s17, 4  ;;  %p1437_p2 = scmp.lt.s32.totalorder %s1435_s13, %s1431_s10  ;;  %s1202_s21 = int_to_ptr.vmem [resolvable:$true] %s1201_s21 }
  0x32   : > { %567 = vmatpush.msra.mxu2 %v536_v56  ;;  %632 = vmatpush.msra.mxu3 %v552_v57 }
  0x33   : > { %365 = vmatpush.msra.mxu0 %v318_v30  ;;  %430 = vmatpush.msra.mxu1 %v319_v31  ;;  %p1438_p3 = por %p1437_p2, %p1436_p1 }
  0x34   : > { %366 = vmatmul.f32.vlgmr.msra.gmra.mxu0 %v1686_v32  ;;  %431 = vmatmul.f32.vlgmr.msra.gmra.mxu1 %v1686_v32 }
  0x35   : > { %568 = vmatpush.msra.mxu2 %v535_v59  ;;  %633 = vmatpush.msra.mxu3 %v551_v60  ;;  %p1439_p5 = pnand %p1438_p3, %p1434_p0 }
  0x37   : > { %569 = vmatpush.msra.mxu2 %v534_v61  ;;  %634 = vmatpush.msra.mxu3 %v550_v62 }
  0x39   : > { %570 = vmatpush.msra.mxu2 %v533_v63  ;;  %635 = vmatpush.msra.mxu3 %v549_v0 }
  0x3b   : > { %571 = vmatpush.msra.mxu2 %v532_v1  ;;  %636 = vmatpush.msra.mxu3 %v548_v2 }
  0x3c   : > { %369 = vmatmul.f32.gmra.mxu0 %v1691_v33  ;;  %434 = vmatmul.f32.gmra.mxu1 %v1691_v33 }
  0x3d   : > { %572 = vmatpush.msra.mxu2 %v531_v4  ;;  %637 = vmatpush.msra.mxu3 %v547_v5 }
  0x3f   : > { %573 = vmatpush.msra.mxu2 %v530_v6  ;;  %638 = vmatpush.msra.mxu3 %v546_v7 }
  0x41   : > { %574 = vmatpush.msra.mxu2 %v529_v8  ;;  %639 = vmatpush.msra.mxu3 %v545_v9 }
  0x43   : > { %575 = vmatpush.msra.mxu2 %v528_v11  ;;  %640 = vmatpush.msra.mxu3 %v544_v12 }
  0x44   : > { %372 = vmatmul.f32.gmra.mxu0 %v1696_v34  ;;  %437 = vmatmul.f32.gmra.mxu1 %v1696_v34 }
  0x4c   : > { %375 = vmatmul.f32.gmra.mxu0 %v1701_v35  ;;  %440 = vmatmul.f32.gmra.mxu1 %v1701_v35 }
  0x54   : > { %378 = vmatmul.f32.gmra.mxu0 %v1706_v36  ;;  %443 = vmatmul.f32.gmra.mxu1 %v1706_v36 }
  0x5c   : > { %381 = vmatmul.f32.gmra.mxu0 %v1711_v37  ;;  %446 = vmatmul.f32.gmra.mxu1 %v1711_v37 }
  0x64   : > { %384 = vmatmul.f32.gmra.mxu0 %v1716_v38  ;;  %449 = vmatmul.f32.gmra.mxu1 %v1716_v38 }
  0x6c   : > { %387 = vmatmul.f32.gmra.mxu0 %v1721_v39  ;;  %452 = vmatmul.f32.gmra.mxu1 %v1721_v39 }
  0x74   : > { %390 = vmatmul.f32.gmra.mxu0 %v1726_v40  ;;  %455 = vmatmul.f32.gmra.mxu1 %v1726_v40 }
  0x7c   : > { %393 = vmatmul.f32.gmra.mxu0 %v1755_v49  ;;  %458 = vmatmul.f32.gmra.mxu1 %v1755_v49 }
  0x84   : > { %396 = vmatmul.f32.gmra.mxu0 %v1784_v58  ;;  %461 = vmatmul.f32.gmra.mxu1 %v1784_v58 }
  0x8c   : > { %399 = vmatmul.f32.gmra.mxu0 %v1813_v3  ;;  %464 = vmatmul.f32.gmra.mxu1 %v1813_v3 }
  0x94   : > { %402 = vmatmul.f32.gmra.mxu0 %v1836_v10  ;;  %467 = vmatmul.f32.gmra.mxu1 %v1836_v10 }
  0x9c   : > { %405 = vmatmul.f32.gmra.mxu0 %v1847_v13  ;;  %470 = vmatmul.f32.gmra.mxu1 %v1847_v13 }
  0xa4   : > { %408 = vmatmul.f32.gmra.mxu0 %v1852_v14  ;;  %473 = vmatmul.f32.gmra.mxu1 %v1852_v14 }
  0xac   : > { %411 = vmatmul.f32.gmra.mxu0 %v1857_v15  ;;  %476 = vmatmul.f32.gmra.mxu1 %v1857_v15 }
  0xb1   : > { %v367_v16 = vpop.f32.mrf.mxu0  ;;  %v432_v17 = vpop.f32.mrf.mxu1 }
  0xb2   : > { %v480_v18 = vmax.f32 %v367_v16, 0.0  ;;  %v481_v19 = vmax.f32 %v432_v17, 0.0 }
  0xb4   : > { %576 = vmatmul.f32.vlgmr.msra.gmra.mxu2 %v480_v18  ;;  %641 = vmatmul.f32.vlgmr.msra.gmra.mxu3 %v481_v19 }
  0xb9   : > { %v370_v20 = vpop.f32.mrf.mxu0  ;;  %v435_v21 = vpop.f32.mrf.mxu1 }
  0xba   : > { %v482_v22 = vmax.f32 %v370_v20, 0.0  ;;  %v483_v23 = vmax.f32 %v435_v21, 0.0 }
  0xbc   : > { %579 = vmatmul.f32.gmra.mxu2 %v482_v22  ;;  %644 = vmatmul.f32.gmra.mxu3 %v483_v23 }
  0xc1   : > { %v373_v24 = vpop.f32.mrf.mxu0  ;;  %v438_v25 = vpop.f32.mrf.mxu1 }
  0xc2   : > { %v484_v26 = vmax.f32 %v373_v24, 0.0  ;;  %v485_v27 = vmax.f32 %v438_v25, 0.0 }
  0xc4   : > { %582 = vmatmul.f32.gmra.mxu2 %v484_v26  ;;  %647 = vmatmul.f32.gmra.mxu3 %v485_v27 }
  0xc9   : > { %v376_v28 = vpop.f32.mrf.mxu0  ;;  %v441_v29 = vpop.f32.mrf.mxu1 }
  0xca   : > { %v486_v30 = vmax.f32 %v376_v28, 0.0  ;;  %v487_v31 = vmax.f32 %v441_v29, 0.0 }
  0xcc   : > { %585 = vmatmul.f32.gmra.mxu2 %v486_v30  ;;  %650 = vmatmul.f32.gmra.mxu3 %v487_v31 }
  0xd1   : > { %v379_v41 = vpop.f32.mrf.mxu0  ;;  %v444_v42 = vpop.f32.mrf.mxu1 }
  0xd2   : > { %v488_v43 = vmax.f32 %v379_v41, 0.0  ;;  %v489_v44 = vmax.f32 %v444_v42, 0.0 }
  0xd4   : > { %588 = vmatmul.f32.gmra.mxu2 %v488_v43  ;;  %653 = vmatmul.f32.gmra.mxu3 %v489_v44 }
  0xd9   : > { %v382_v45 = vpop.f32.mrf.mxu0  ;;  %v447_v46 = vpop.f32.mrf.mxu1 }
  0xda   : > { %v490_v47 = vmax.f32 %v382_v45, 0.0  ;;  %v491_v48 = vmax.f32 %v447_v46, 0.0 }
  0xdc   : > { %591 = vmatmul.f32.gmra.mxu2 %v490_v47  ;;  %656 = vmatmul.f32.gmra.mxu3 %v491_v48 }
  0xe1   : > { %v385_v50 = vpop.f32.mrf.mxu0  ;;  %v450_v51 = vpop.f32.mrf.mxu1 }
  0xe2   : > { %v492_v52 = vmax.f32 %v385_v50, 0.0  ;;  %v493_v53 = vmax.f32 %v450_v51, 0.0 }
  0xe4   : > { %594 = vmatmul.f32.gmra.mxu2 %v492_v52  ;;  %659 = vmatmul.f32.gmra.mxu3 %v493_v53 }
  0xe9   : > { %v388_v54 = vpop.f32.mrf.mxu0  ;;  %v453_v55 = vpop.f32.mrf.mxu1 }
  0xea   : > { %v494_v56 = vmax.f32 %v388_v54, 0.0  ;;  %v495_v57 = vmax.f32 %v453_v55, 0.0 }
  0xec   : > { %597 = vmatmul.f32.gmra.mxu2 %v494_v56  ;;  %662 = vmatmul.f32.gmra.mxu3 %v495_v57 }
  0xf1   : > { %v391_v59 = vpop.f32.mrf.mxu0  ;;  %v456_v60 = vpop.f32.mrf.mxu1 }
  0xf2   : > { %v496_v61 = vmax.f32 %v391_v59, 0.0  ;;  %v497_v62 = vmax.f32 %v456_v60, 0.0 }
  0xf4   : > { %600 = vmatmul.f32.gmra.mxu2 %v496_v61  ;;  %665 = vmatmul.f32.gmra.mxu3 %v497_v62 }
  0xf9   : > { %v394_v63 = vpop.f32.mrf.mxu0  ;;  %v459_v0 = vpop.f32.mrf.mxu1 }
  0xfa   : > { %v498_v1 = vmax.f32 %v394_v63, 0.0  ;;  %v499_v2 = vmax.f32 %v459_v0, 0.0 }
  0xfc   : > { %603 = vmatmul.f32.gmra.mxu2 %v498_v1  ;;  %668 = vmatmul.f32.gmra.mxu3 %v499_v2 }
 0x101   : > { %v397_v4 = vpop.f32.mrf.mxu0  ;;  %v462_v5 = vpop.f32.mrf.mxu1 }
 0x102   : > { %v500_v6 = vmax.f32 %v397_v4, 0.0  ;;  %v501_v7 = vmax.f32 %v462_v5, 0.0 }
 0x104   : > { %606 = vmatmul.f32.gmra.mxu2 %v500_v6  ;;  %671 = vmatmul.f32.gmra.mxu3 %v501_v7 }
 0x109   : > { %v400_v8 = vpop.f32.mrf.mxu0  ;;  %v465_v9 = vpop.f32.mrf.mxu1 }
 0x10a   : > { %v502_v11 = vmax.f32 %v400_v8, 0.0  ;;  %v503_v12 = vmax.f32 %v465_v9, 0.0 }
 0x10c   : > { %609 = vmatmul.f32.gmra.mxu2 %v502_v11  ;;  %674 = vmatmul.f32.gmra.mxu3 %v503_v12 }
 0x111   : > { %v403_v16 = vpop.f32.mrf.mxu0  ;;  %v468_v17 = vpop.f32.mrf.mxu1 }
 0x112   : > { %v504_v18 = vmax.f32 %v403_v16, 0.0  ;;  %v505_v19 = vmax.f32 %v468_v17, 0.0 }
 0x114   : > { %612 = vmatmul.f32.gmra.mxu2 %v504_v18  ;;  %677 = vmatmul.f32.gmra.mxu3 %v505_v19 }
 0x119   : > { %v406_v20 = vpop.f32.mrf.mxu0  ;;  %v471_v21 = vpop.f32.mrf.mxu1 }
 0x11a   : > { %v506_v22 = vmax.f32 %v406_v20, 0.0  ;;  %v507_v23 = vmax.f32 %v471_v21, 0.0 }
 0x11c   : > { %615 = vmatmul.f32.gmra.mxu2 %v506_v22  ;;  %680 = vmatmul.f32.gmra.mxu3 %v507_v23 }
 0x121   : > { %v409_v24 = vpop.f32.mrf.mxu0  ;;  %v474_v25 = vpop.f32.mrf.mxu1 }
 0x122   : > { %v508_v26 = vmax.f32 %v409_v24, 0.0  ;;  %v509_v27 = vmax.f32 %v474_v25, 0.0 }
 0x124   : > { %618 = vmatmul.f32.gmra.mxu2 %v508_v26  ;;  %683 = vmatmul.f32.gmra.mxu3 %v509_v27 }
 0x129   : > { %v412_v28 = vpop.f32.mrf.mxu0  ;;  %v477_v29 = vpop.f32.mrf.mxu1 }
 0x12a   : > { %v510_v30 = vmax.f32 %v412_v28, 0.0  ;;  %v511_v31 = vmax.f32 %v477_v29, 0.0 }
 0x12c   : > { %621 = vmatmul.f32.gmra.mxu2 %v510_v30  ;;  %686 = vmatmul.f32.gmra.mxu3 %v511_v31 }
 0x137   : > { %v577_v41 = vpop.f32.mrf.mxu2  ;;  %v642_v42 = vpop.f32.mrf.mxu3 }
 0x138   : > { %v643_v43 = vadd.f32 %v642_v42, %v577_v41 }
 0x13a   : > { %v1862_v44 = vadd.f32 %v643_v43, %v1686_v32  ;;  %v1495_v43 = vmov 128.0  }
 0x13b   : > { %1381 = vrcp.f32 %v1495_v43 }
 0x13c   : > { %773 = vadd.xlane.f32.xlu0 %v1862_v44  ;;  %v828_v45 = vmul.f32 %v1862_v44, %v1862_v44 }
 0x13e   : > { %844 = vadd.xlane.f32.xlu1 %v828_v45 }
 0x13f   : > { %v580_v46 = vpop.f32.mrf.mxu2  ;;  %v645_v47 = vpop.f32.mrf.mxu3 }
 0x140   : > { %v646_v48 = vadd.f32 %v645_v47, %v580_v46 }
 0x141   : > { %v1382_v47 = vpop.eup %1381 }
 0x142   : > { %v1868_v50 = vadd.f32 %v646_v48, %v1691_v33  ;;  %vm810_vm0 = vweird.f32 %v1382_v47 }
 0x144   : > { %775 = vadd.xlane.f32.xlu0 %v1868_v50  ;;  %v829_v51 = vmul.f32 %v1868_v50, %v1868_v50 }
 0x146   : > { %846 = vadd.xlane.f32.xlu2 %v829_v51 }
 0x147   : > { %v583_v52 = vpop.f32.mrf.mxu2  ;;  %v648_v32 = vpop.f32.mrf.mxu3 }
 0x148   : > { %v649_v53 = vadd.f32 %v648_v32, %v583_v52  ;;  %v806_v32 = vmul.f32 128.0, %v1382_v47 }
 0x14a   : > { %v1874_v54 = vadd.f32 %v649_v53, %v1696_v34 }
 0x14c   : > { %777 = vadd.xlane.f32.xlu1 %v1874_v54  ;;  %v830_v55 = vmul.f32 %v1874_v54, %v1874_v54 }
 0x14e   : > { %848 = vadd.xlane.f32.xlu0 %v830_v55  ;;  %v807_v55 = vsub.f32 1.0, %v806_v32 }
 0x14f   : > { %v586_v56 = vpop.f32.mrf.mxu2  ;;  %v651_v33 = vpop.f32.mrf.mxu3 }
 0x150   : > { %v652_v57 = vadd.f32 %v651_v33, %v586_v56 }
 0x152   : > { %v1880_v59 = vadd.f32 %v652_v57, %v1701_v35 }
 0x154   : > { %779 = vadd.xlane.f32.xlu1 %v1880_v59  ;;  %v831_v63 = vmul.f32 %v1880_v59, %v1880_v59 }
 0x157   : > { %v589_v60 = vpop.f32.mrf.mxu2  ;;  %v654_v61 = vpop.f32.mrf.mxu3 }
 0x158   : > { %v655_v62 = vadd.f32 %v654_v61, %v589_v60  ;;  %v808_v60 = vmul.f32 %v1382_v47, %v807_v55 }
 0x15a   : > { %v1884_v34 = vadd.f32 %v655_v62, %v1706_v36 }
 0x15c   : > { %781 = vadd.xlane.f32.xlu2 %v1884_v34  ;;  %850 = vadd.xlane.f32.xlu1 %v831_v63  ;;  %v832_v35 = vmul.f32 %v1884_v34, %v1884_v34 }
 0x15f   : > { %v592_v0 = vpop.f32.mrf.mxu2  ;;  %v657_v1 = vpop.f32.mrf.mxu3 }
 0x160   : > { %v658_v2 = vadd.f32 %v657_v1, %v592_v0 }
 0x162   : > { %v1892_v4 = vadd.f32 %v658_v2, %v1711_v37 }
 0x164   : > { %852 = vadd.xlane.f32.xlu2 %v832_v35  ;;  %v833_v36 = vmul.f32 %v1892_v4, %v1892_v4 }
 0x166   : > { %854 = vadd.xlane.f32.xlu0 %v833_v36 }
 0x167   : > { %v595_v5 = vpop.f32.mrf.mxu2  ;;  %v660_v6 = vpop.f32.mrf.mxu3 }
 0x168   : > { %v661_v7 = vadd.f32 %v660_v6, %v595_v5 }
 0x16a   : > { %v1897_v8 = vadd.f32 %v661_v7, %v1716_v38 }
 0x16c   : > { %783 = vadd.xlane.f32.xlu2 %v1892_v4  ;;  %v834_v9 = vmul.f32 %v1897_v8, %v1897_v8 }
 0x16e   : > { %785 = vadd.xlane.f32.xlu0 %v1897_v8  ;;  %856 = vadd.xlane.f32.xlu1 %v834_v9 }
 0x16f   : > { %v598_v11 = vpop.f32.mrf.mxu2  ;;  %v663_v12 = vpop.f32.mrf.mxu3 }
 0x170   : > { %v664_v37 = vadd.f32 %v663_v12, %v598_v11 }
 0x172   : > { %v1904_v16 = vadd.f32 %v664_v37, %v1721_v39 }
 0x174   : > { %v835_v17 = vmul.f32 %v1904_v16, %v1904_v16 }
 0x176   : > { %858 = vadd.xlane.f32.xlu2 %v835_v17  ;;  %787 = vadd.xlane.f32.xlu1 %v1904_v16 }
 0x177   : > { %v601_v18 = vpop.f32.mrf.mxu2  ;;  %v666_v38 = vpop.f32.mrf.mxu3 }
 0x178   : > { %v667_v19 = vadd.f32 %v666_v38, %v601_v18 }
 0x17a   : > { %v1910_v20 = vadd.f32 %v667_v19, %v1726_v40 }
 0x17c   : > { %v836_v21 = vmul.f32 %v1910_v20, %v1910_v20 }
 0x17e   : > { %789 = vadd.xlane.f32.xlu2 %v1910_v20  ;;  %860 = vadd.xlane.f32.xlu0 %v836_v21 }
 0x17f   : > { %v604_v22 = vpop.f32.mrf.mxu2  ;;  %v669_v23 = vpop.f32.mrf.mxu3 }
 0x180   : > { %v670_v24 = vadd.f32 %v669_v23, %v604_v22 }
 0x182   : > { %v1916_v39 = vadd.f32 %v670_v24, %v1755_v49 }
 0x184   : > { %v837_v25 = vmul.f32 %v1916_v39, %v1916_v39 }
 0x186   : > { %791 = vadd.xlane.f32.xlu0 %v1916_v39  ;;  %862 = vadd.xlane.f32.xlu1 %v837_v25 }
 0x187   : > { %v607_v26 = vpop.f32.mrf.mxu2  ;;  %v672_v27 = vpop.f32.mrf.mxu3 }
 0x188   : > { %v673_v28 = vadd.f32 %v672_v27, %v607_v26 }
 0x18a   : > { %v1922_v40 = vadd.f32 %v673_v28, %v1784_v58 }
 0x18c   : > { %v838_v29 = vmul.f32 %v1922_v40, %v1922_v40 }
 0x18e   : > { %864 = vadd.xlane.f32.xlu2 %v838_v29  ;;  %793 = vadd.xlane.f32.xlu1 %v1922_v40 }
 0x18f   : > { %v610_v30 = vpop.f32.mrf.mxu2  ;;  %v675_v31 = vpop.f32.mrf.mxu3 }
 0x190   : > { %v676_v41 = vadd.f32 %v675_v31, %v610_v30 }
 0x192   : > { %v1928_v49 = vadd.f32 %v676_v41, %v1813_v3 }
 0x194   : > { %v839_v42 = vmul.f32 %v1928_v49, %v1928_v49 }
 0x196   : > { %795 = vadd.xlane.f32.xlu2 %v1928_v49  ;;  %866 = vadd.xlane.f32.xlu0 %v839_v42 }
 0x197   : > { %v613_v45 = vpop.f32.mrf.mxu2  ;;  %v678_v58 = vpop.f32.mrf.mxu3 }
 0x198   : > { %v679_v46 = vadd.f32 %v678_v58, %v613_v45 }
 0x19a   : > { %v1934_v48 = vadd.f32 %v679_v46, %v1836_v10  ;;  %v809_v10 = vadd.f32 %v1382_v47, %v808_v60 }
 0x19c   : > { %v840_v51 = vmul.f32 %v1934_v48, %v1934_v48  ;;  %v1947_v1 = vsel %vm810_vm0, %v1382_v47, %v809_v10 }
 0x19e   : > { %797 = vadd.xlane.f32.xlu0 %v1934_v48  ;;  %868 = vadd.xlane.f32.xlu1 %v840_v51 }
 0x19f   : > { %v616_v3 = vpop.f32.mrf.mxu2  ;;  %v681_v52 = vpop.f32.mrf.mxu3 }
 0x1a0   : > { %v682_v53 = vadd.f32 %v681_v52, %v616_v3  ;;  %v1974_v3 = vld [vmem:[%s2167_s3] ss:$0 sm:$0xff] }
 0x1a2   : > { %v1940_v56 = vadd.f32 %v682_v53, %v1847_v13  ;;  %v1981_v53 = vld [vmem:[%s2168_s4] ss:$0 sm:$0xff] }
 0x1a4   : > { %v841_v7 = vmul.f32 %v1940_v56, %v1940_v56 }
 0x1a6   : > { %799 = vadd.xlane.f32.xlu1 %v1940_v56 }
 0x1a7   : > { %v619_v33 = vpop.f32.mrf.mxu2  ;;  %v684_v57 = vpop.f32.mrf.mxu3 }
 0x1a8   : > { %v685_v61 = vadd.f32 %v684_v57, %v619_v33 }
 0x1aa   : > { %v1944_v62 = vadd.f32 %v685_v61, %v1852_v14 }
 0x1ac   : > { %801 = vadd.xlane.f32.xlu2 %v1944_v62 }
 0x1af   : > { %v622_v63 = vpop.f32.mrf.mxu2  ;;  %v687_v0 = vpop.f32.mrf.mxu3 }
 0x1b0   : > { %v688_v2 = vadd.f32 %v687_v0, %v622_v63  ;;  %v774_v13 = vpop.xlane.xlu0 %773 }
 0x1b1   : > { %v812_v35 = vmul.f32 %v1947_v1, %v774_v13  ;;  %v845_v36 = vpop.xlane.xlu1 %844 }
 0x1b2   : > { %v876_v6 = vmul.f32 %v845_v36, %v1947_v1  ;;  %v1954_v14 = vadd.f32 %v688_v2, %v1857_v15  ;;  %v842_v15 = vmul.f32 %v1944_v62, %v1944_v62 }
 0x1b3   : > { %v892_v5 = vmul.f32 %v812_v35, %v812_v35  ;;  %v924_v51 = vsub.f32 %v1862_v44, %v812_v35 }
 0x1b4   : > { %870 = vadd.xlane.f32.xlu2 %v841_v7  ;;  %803 = vadd.xlane.f32.xlu0 %v1954_v14  ;;  %v843_v11 = vmul.f32 %v1954_v14, %v1954_v14 }
 0x1b5   : > { %v908_v9 = vsub.f32 %v876_v6, %v892_v5 }
 0x1b6   : > { %874 = vadd.xlane.f32.xlu1 %v843_v11 }
 0x1b7   : > { %v940_v12 = vadd.f32 1e-06, %v908_v9 }
 0x1b8   : > { %v776_v37 = vpop.xlane.xlu0 %775 }
 0x1b9   : > { %1383 = vrsqrt.f32 %v940_v12  ;;  %v813_v17 = vmul.f32 %v1947_v1, %v776_v37  ;;  %v847_v18 = vpop.xlane.xlu2 %846  ;;  %vm962_vm2 = vweird.f32 %v940_v12 }
 0x1ba   : > { %v877_v19 = vmul.f32 %v847_v18, %v1947_v1 }
 0x1bb   : > { %v893_v38 = vmul.f32 %v813_v17, %v813_v17  ;;  %v925_v35 = vsub.f32 %v1868_v50, %v813_v17 }
 0x1bc   : > { %872 = vadd.xlane.f32.xlu0 %v842_v15 }
 0x1bd   : > { %v909_v21 = vsub.f32 %v877_v19, %v893_v38 }
 0x1bf   : > { %v1384_v22 = vpop.eup %1383  ;;  %v941_v23 = vadd.f32 1e-06, %v909_v21  ;;  %v778_v25 = vpop.xlane.xlu1 %777 }
 0x1c0   : > { %v957_v24 = vmul.f32 %v1384_v22, %v940_v12  ;;  %v1964_v26 = vmul.f32 %v1947_v1, %v778_v25  ;;  %vm963_vm1 = vweird.f32 %v1384_v22 }
 0x1c1   : > { %1385 = vrsqrt.f32 %v941_v23  ;;  %v849_v28 = vpop.xlane.xlu0 %848  ;;  %vm964_vm3 = vmor %vm962_vm2, %vm963_vm1  ;;  %vm972_vm5 = vweird.f32 %v941_v23 }
 0x1c2   : > { %v958_v27 = vmul.f32 %v1384_v22, %v957_v24  ;;  %v894_v29 = vmul.f32 %v1964_v26, %v1964_v26  ;;  %v878_v30 = vmul.f32 %v849_v28, %v1947_v1  ;;  %v926_v21 = vsub.f32 %v1874_v54, %v1964_v26 }
 0x1c4   : > { %v959_v31 = vmul.f32 0.5, %v958_v27  ;;  %v910_v41 = vsub.f32 %v878_v30, %v894_v29 }
 0x1c6   : > { %v960_v42 = vsub.f32 1.5, %v959_v31  ;;  %v942_v45 = vadd.f32 1e-06, %v910_v41 }
 0x1c7   : > { %v1386_v43 = vpop.eup %1385  ;;  %v780_v47 = vpop.xlane.xlu1 %779 }
 0x1c8   : > { %v961_v58 = vmul.f32 %v1384_v22, %v960_v42  ;;  %v967_v46 = vmul.f32 %v1386_v43, %v941_v23  ;;  %1387 = vrsqrt.f32 %v942_v45  ;;  %v1985_v57 = vmul.f32 %v1947_v1, %v780_v47 }
 0x1c9   : > { %vm973_vm4 = vweird.f32 %v1386_v43  ;;  %vm982_vm8 = vweird.f32 %v942_v45 }
 0x1ca   : > { %v965_v52 = vsel %vm964_vm3, %v1384_v22, %v961_v58  ;;  %v968_v32 = vmul.f32 %v1386_v43, %v967_v46  ;;  %vm974_vm6 = vmor %vm972_vm5, %vm973_vm4  ;;  %v895_v36 = vmul.f32 %v1985_v57, %v1985_v57 }
 0x1cb   : > { %v1116_v55 = vmul.f32 %v965_v52, %v924_v51 }
 0x1cc   : > { %v969_v33 = vmul.f32 0.5, %v968_v32 }
 0x1cd   : > { %v1136_v44 = vmul.f32 %v1974_v3, %v1116_v55 }
 0x1ce   : > { %v970_v60 = vsub.f32 1.5, %v969_v33  ;;  %v1388_v61 = vpop.eup %1387 }
 0x1cf   : > { %v1156_v10 = vadd.f32 %v1981_v53, %v1136_v44  ;;  %v977_v0 = vmul.f32 %v1388_v61, %v942_v45  ;;  %v782_v2 = vpop.xlane.xlu2 %781  ;;  %v851_v13 = vpop.xlane.xlu1 %850  ;;  %vm983_vm7 = vweird.f32 %v1388_v61 }
 0x1d0   : > { %v971_v63 = vmul.f32 %v1386_v43, %v970_v60  ;;  %v879_v5 = vmul.f32 %v851_v13, %v1947_v1  ;;  %v1997_v18 = vmul.f32 %v1947_v1, %v782_v2  ;;  %vm984_vm9 = vmor %vm982_vm8, %vm983_vm7 }
 0x1d1   : > { %1172 = vst [vmem:[%s1988_s17] sm:$0xff] %v1156_v10  ;;  %v978_v7 = vmul.f32 %v1388_v61, %v977_v0 }
 0x1d2   : > { %v975_v6 = vsel %vm974_vm6, %v1386_v43, %v971_v63  ;;  %v911_v11 = vsub.f32 %v879_v5, %v895_v36  ;;  %v896_v22 = vmul.f32 %v1997_v18, %v1997_v18  ;;  %v927_v63 = vsub.f32 %v1880_v59, %v1985_v57 }
 0x1d3   : > { %v1117_v9 = vmul.f32 %v975_v6, %v925_v35  ;;  %v979_v12 = vmul.f32 0.5, %v978_v7 }
 0x1d4   : > { %v943_v38 = vadd.f32 1e-06, %v911_v11 }
 0x1d5   : > { %v1137_v37 = vmul.f32 %v1974_v3, %v1117_v9  ;;  %v980_v19 = vsub.f32 1.5, %v979_v12 }
 0x1d6   : > { %1389 = vrsqrt.f32 %v943_v38  ;;  %vm992_vm11 = vweird.f32 %v943_v38 }
 0x1d7   : > { %v1157_v50 = vadd.f32 %v1981_v53, %v1137_v37  ;;  %v981_v17 = vmul.f32 %v1388_v61, %v980_v19  ;;  %v853_v15 = vpop.xlane.xlu2 %852 }
 0x1d8   : > { %v880_v23 = vmul.f32 %v853_v15, %v1947_v1 }
 0x1d9   : > { %1173 = vst [vmem:[%s1988_s17 + $0x8] sm:$0xff] %v1157_v50  ;;  %v985_v24 = vsel %vm984_vm9, %v1388_v61, %v981_v17  ;;  %v855_v25 = vpop.xlane.xlu0 %854  ;;  %v928_v17 = vsub.f32 %v1884_v34, %v1997_v18 }
 0x1da   : > { %v1118_v27 = vmul.f32 %v985_v24, %v926_v21  ;;  %v912_v28 = vsub.f32 %v880_v23, %v896_v22  ;;  %v881_v47 = vmul.f32 %v855_v25, %v1947_v1 }
 0x1dc   : > { %v1390_v29 = vpop.eup %1389  ;;  %v1138_v30 = vmul.f32 %v1974_v3, %v1118_v27  ;;  %v944_v31 = vadd.f32 1e-06, %v912_v28 }
 0x1dd   : > { %v987_v41 = vmul.f32 %v1390_v29, %v943_v38  ;;  %vm993_vm10 = vweird.f32 %v1390_v29 }
 0x1de   : > { %v1158_v42 = vadd.f32 %v1981_v53, %v1138_v30  ;;  %1391 = vrsqrt.f32 %v944_v31  ;;  %vm994_vm12 = vmor %vm992_vm11, %vm993_vm10  ;;  %vm1002_vm14 = vweird.f32 %v944_v31 }
 0x1df   : > { %v988_v54 = vmul.f32 %v1390_v29, %v987_v41  ;;  %v784_v26 = vpop.xlane.xlu2 %783 }
 0x1e0   : > { %1174 = vst [vmem:[%s1988_s17 + $0x10] sm:$0xff] %v1158_v42  ;;  %v2010_v43 = vmul.f32 %v1947_v1, %v784_v26 }
 0x1e1   : > { %v989_v45 = vmul.f32 0.5, %v988_v54  ;;  %v786_v58 = vpop.xlane.xlu0 %785  ;;  %v857_v46 = vpop.xlane.xlu1 %856 }
 0x1e2   : > { %v897_v51 = vmul.f32 %v2010_v43, %v2010_v43  ;;  %v2016_v52 = vmul.f32 %v1947_v1, %v786_v58  ;;  %v882_v60 = vmul.f32 %v857_v46, %v1947_v1 }
 0x1e3   : > { %v990_v32 = vsub.f32 1.5, %v989_v45 }
 0x1e4   : > { %v1392_v55 = vpop.eup %1391  ;;  %v913_v33 = vsub.f32 %v881_v47, %v897_v51  ;;  %v898_v44 = vmul.f32 %v2016_v52, %v2016_v52 }
 0x1e5   : > { %v991_v61 = vmul.f32 %v1390_v29, %v990_v32  ;;  %v997_v10 = vmul.f32 %v1392_v55, %v944_v31  ;;  %vm1003_vm13 = vweird.f32 %v1392_v55  ;;  %v929_v32 = vsub.f32 %v1892_v4, %v2010_v43 }
 0x1e6   : > { %v945_v0 = vadd.f32 1e-06, %v913_v33  ;;  %v914_v2 = vsub.f32 %v882_v60, %v898_v44  ;;  %vm1004_vm15 = vmor %vm1002_vm14, %vm1003_vm13 }
 0x1e7   : > { %v995_v13 = vsel %vm994_vm12, %v1390_v29, %v991_v61  ;;  %v998_v35 = vmul.f32 %v1392_v55, %v997_v10 }
 0x1e8   : > { %v1119_v36 = vmul.f32 %v995_v13, %v927_v63  ;;  %1393 = vrsqrt.f32 %v945_v0  ;;  %v946_v5 = vadd.f32 1e-06, %v914_v2  ;;  %vm1012_vm1 = vweird.f32 %v945_v0 }
 0x1e9   : > { %v999_v6 = vmul.f32 0.5, %v998_v35  ;;  %v859_v7 = vpop.xlane.xlu2 %858  ;;  %v788_v9 = vpop.xlane.xlu1 %787  ;;  %v930_v2 = vsub.f32 %v1897_v8, %v2016_v52 }
 0x1ea   : > { %v1139_v11 = vmul.f32 %v1974_v3, %v1119_v36  ;;  %1395 = vrsqrt.f32 %v946_v5  ;;  %v2025_v37 = vmul.f32 %v1947_v1, %v788_v9  ;;  %v883_v38 = vmul.f32 %v859_v7, %v1947_v1 }
 0x1eb   : > { %v1000_v12 = vsub.f32 1.5, %v999_v6  ;;  %vm1022_vm4 = vweird.f32 %v946_v5 }
 0x1ec   : > { %v1159_v59 = vadd.f32 %v1981_v53, %v1139_v11  ;;  %v899_v19 = vmul.f32 %v2025_v37, %v2025_v37 }
 0x1ed   : > { %v1001_v57 = vmul.f32 %v1392_v55, %v1000_v12 }
 0x1ee   : > { %v1394_v50 = vpop.eup %1393  ;;  %1175 = vst [vmem:[%s1988_s17 + $0x18] sm:$0xff] %v1159_v59  ;;  %v915_v22 = vsub.f32 %v883_v38, %v899_v19 }
 0x1ef   : > { %v1005_v15 = vsel %vm1004_vm15, %v1392_v55, %v1001_v57  ;;  %v1007_v21 = vmul.f32 %v1394_v50, %v945_v0  ;;  %vm1013_vm0 = vweird.f32 %v1394_v50 }
 0x1f0   : > { %v1396_v23 = vpop.eup %1395  ;;  %v1120_v24 = vmul.f32 %v1005_v15, %v928_v17  ;;  %v947_v28 = vadd.f32 1e-06, %v915_v22  ;;  %vm1014_vm3 = vmor %vm1012_vm1, %vm1013_vm0 }
 0x1f1   : > { %v1008_v25 = vmul.f32 %v1394_v50, %v1007_v21  ;;  %v1017_v27 = vmul.f32 %v1396_v23, %v946_v5  ;;  %v790_v29 = vpop.xlane.xlu2 %789  ;;  %v861_v30 = vpop.xlane.xlu0 %860  ;;  %vm1023_vm2 = vweird.f32 %v1396_v23  ;;  %v931_v21 = vsub.f32 %v1904_v16, %v2025_v37 }
 0x1f2   : > { %v1140_v31 = vmul.f32 %v1974_v3, %v1120_v24  ;;  %v2036_v41 = vmul.f32 %v1947_v1, %v790_v29  ;;  %1397 = vrsqrt.f32 %v947_v28  ;;  %v884_v26 = vmul.f32 %v861_v30, %v1947_v1  ;;  %vm1024_vm5 = vmor %vm1022_vm4, %vm1023_vm2 }
 0x1f3   : > { %v1009_v42 = vmul.f32 0.5, %v1008_v25  ;;  %v1018_v34 = vmul.f32 %v1396_v23, %v1017_v27  ;;  %vm1032_vm7 = vweird.f32 %v947_v28 }
 0x1f4   : > { %v1160_v18 = vadd.f32 %v1981_v53, %v1140_v31  ;;  %v900_v54 = vmul.f32 %v2036_v41, %v2036_v41 }
 0x1f5   : > { %v1010_v45 = vsub.f32 1.5, %v1009_v42  ;;  %v1019_v58 = vmul.f32 0.5, %v1018_v34 }
 0x1f6   : > { %1176 = vst [vmem:[%s1988_s17 + $0x20] sm:$0xff] %v1160_v18  ;;  %v916_v46 = vsub.f32 %v884_v26, %v900_v54  ;;  %v932_v26 = vsub.f32 %v1910_v20, %v2036_v41 }
 0x1f7   : > { %v1011_v47 = vmul.f32 %v1394_v50, %v1010_v45  ;;  %v1020_v51 = vsub.f32 1.5, %v1019_v58 }
 0x1f8   : > { %v948_v55 = vadd.f32 1e-06, %v916_v46  ;;  %v1398_v33 = vpop.eup %1397 }
 0x1f9   : > { %v1015_v44 = vsel %vm1014_vm3, %v1394_v50, %v1011_v47  ;;  %v1021_v60 = vmul.f32 %v1396_v23, %v1020_v51  ;;  %v792_v61 = vpop.xlane.xlu0 %791  ;;  %v863_v10 = vpop.xlane.xlu1 %862  ;;  %v1027_v0 = vmul.f32 %v1398_v33, %v947_v28  ;;  %vm1033_vm6 = vweird.f32 %v1398_v33 }
 0x1fa   : > { %v1121_v63 = vmul.f32 %v1015_v44, %v929_v32  ;;  %1399 = vrsqrt.f32 %v948_v55  ;;  %v2048_v35 = vmul.f32 %v1947_v1, %v792_v61  ;;  %v885_v6 = vmul.f32 %v863_v10, %v1947_v1  ;;  %vm1034_vm8 = vmor %vm1032_vm7, %vm1033_vm6 }
 0x1fb   : > { %v1025_v13 = vsel %vm1024_vm5, %v1396_v23, %v1021_v60  ;;  %v1028_v36 = vmul.f32 %v1398_v33, %v1027_v0  ;;  %vm1042_vm10 = vweird.f32 %v948_v55 }
 0x1fc   : > { %v1141_v4 = vmul.f32 %v1974_v3, %v1121_v63  ;;  %v1122_v43 = vmul.f32 %v1025_v13, %v930_v2  ;;  %v901_v5 = vmul.f32 %v2048_v35, %v2048_v35 }
 0x1fd   : > { %v1029_v7 = vmul.f32 0.5, %v1028_v36 }
 0x1fe   : > { %v1161_v8 = vadd.f32 %v1981_v53, %v1141_v4  ;;  %v1142_v52 = vmul.f32 %v1974_v3, %v1122_v43  ;;  %v917_v9 = vsub.f32 %v885_v6, %v901_v5  ;;  %v933_v43 = vsub.f32 %v1916_v39, %v2048_v35 }
 0x1ff   : > { %v1030_v59 = vsub.f32 1.5, %v1029_v7 }
 0x200   : > { %v1400_v11 = vpop.eup %1399  ;;  %1177 = vst [vmem:[%s1988_s17 + $0x28] sm:$0xff] %v1161_v8  ;;  %v1162_v12 = vadd.f32 %v1981_v53, %v1142_v52  ;;  %v949_v38 = vadd.f32 1e-06, %v917_v9 }
 0x201   : > { %v1037_v57 = vmul.f32 %v1400_v11, %v948_v55  ;;  %v865_v19 = vpop.xlane.xlu2 %864  ;;  %v794_v50 = vpop.xlane.xlu1 %793  ;;  %v1031_v17 = vmul.f32 %v1398_v33, %v1030_v59  ;;  %vm1043_vm9 = vweird.f32 %v1400_v11 }
 0x202   : > { %1178 = vst [vmem:[%s1988_s17 + $0x30] sm:$0xff] %v1162_v12  ;;  %v2060_v15 = vmul.f32 %v1947_v1, %v794_v50  ;;  %1401 = vrsqrt.f32 %v949_v38  ;;  %v886_v24 = vmul.f32 %v865_v19, %v1947_v1  ;;  %vm1044_vm11 = vmor %vm1042_vm10, %vm1043_vm9  ;;  %vm1052_vm13 = vweird.f32 %v949_v38 }
 0x203   : > { %v1038_v22 = vmul.f32 %v1400_v11, %v1037_v57  ;;  %v1035_v23 = vsel %vm1034_vm8, %v1398_v33, %v1031_v17 }
 0x204   : > { %v902_v25 = vmul.f32 %v2060_v15, %v2060_v15  ;;  %v1123_v27 = vmul.f32 %v1035_v23, %v931_v21 }
 0x205   : > { %v1039_v29 = vmul.f32 0.5, %v1038_v22 }
 0x206   : > { %v918_v30 = vsub.f32 %v886_v24, %v902_v25  ;;  %v1143_v28 = vmul.f32 %v1974_v3, %v1123_v27 }
 0x207   : > { %v1040_v31 = vsub.f32 1.5, %v1039_v29 }
 0x208   : > { %v950_v42 = vadd.f32 1e-06, %v918_v30  ;;  %v1402_v34 = vpop.eup %1401  ;;  %v1163_v16 = vadd.f32 %v1981_v53, %v1143_v28 }
 0x209   : > { %v1041_v37 = vmul.f32 %v1400_v11, %v1040_v31  ;;  %v796_v18 = vpop.xlane.xlu2 %795  ;;  %v867_v54 = vpop.xlane.xlu0 %866  ;;  %v1047_v45 = vmul.f32 %v1402_v34, %v949_v38  ;;  %vm1053_vm12 = vweird.f32 %v1402_v34  ;;  %v934_v38 = vsub.f32 %v1922_v40, %v2060_v15 }
 0x20a   : > { %1403 = vrsqrt.f32 %v950_v42  ;;  %1179 = vst [vmem:[%s1988_s17 + $0x38] sm:$0xff] %v1163_v16  ;;  %v2073_v46 = vmul.f32 %v1947_v1, %v796_v18  ;;  %v887_v55 = vmul.f32 %v867_v54, %v1947_v1  ;;  %vm1054_vm14 = vmor %vm1052_vm13, %vm1053_vm12  ;;  %vm1062_vm0 = vweird.f32 %v950_v42 }
 0x20b   : > { %v1045_v58 = vsel %vm1044_vm11, %v1400_v11, %v1041_v37  ;;  %v1048_v51 = vmul.f32 %v1402_v34, %v1047_v45 }
 0x20c   : > { %v1124_v47 = vmul.f32 %v1045_v58, %v932_v26  ;;  %v903_v32 = vmul.f32 %v2073_v46, %v2073_v46  ;;  %v935_v15 = vsub.f32 %v1928_v49, %v2073_v46 }
 0x20d   : > { %v1049_v44 = vmul.f32 0.5, %v1048_v51 }
 0x20e   : > { %v1144_v33 = vmul.f32 %v1974_v3, %v1124_v47  ;;  %v919_v20 = vsub.f32 %v887_v55, %v903_v32 }
 0x20f   : > { %v1050_v61 = vsub.f32 1.5, %v1049_v44 }
 0x210   : > { %v1404_v41 = vpop.eup %1403  ;;  %v1164_v60 = vadd.f32 %v1981_v53, %v1144_v33  ;;  %v951_v63 = vadd.f32 1e-06, %v919_v20 }
 0x211   : > { %v1057_v10 = vmul.f32 %v1404_v41, %v950_v42  ;;  %v798_v2 = vpop.xlane.xlu0 %797  ;;  %v869_v0 = vpop.xlane.xlu1 %868  ;;  %v1051_v13 = vmul.f32 %v1402_v34, %v1050_v61  ;;  %vm1063_vm15 = vweird.f32 %v1404_v41 }
 0x212   : > { %1180 = vst [vmem:[%s1988_s17 + $0x40] sm:$0xff] %v1164_v60  ;;  %v2082_v4 = vmul.f32 %v1947_v1, %v798_v2  ;;  %1405 = vrsqrt.f32 %v951_v63  ;;  %v888_v8 = vmul.f32 %v869_v0, %v1947_v1  ;;  %vm1064_vm1 = vmor %vm1062_vm0, %vm1063_vm15  ;;  %vm1072_vm3 = vweird.f32 %v951_v63 }
 0x213   : > { %v1058_v36 = vmul.f32 %v1404_v41, %v1057_v10  ;;  %v1055_v5 = vsel %vm1054_vm14, %v1402_v34, %v1051_v13 }
 0x214   : > { %v904_v6 = vmul.f32 %v2082_v4, %v2082_v4  ;;  %v1125_v52 = vmul.f32 %v1055_v5, %v933_v43  ;;  %v936_v55 = vsub.f32 %v1934_v48, %v2082_v4 }
 0x215   : > { %v1059_v7 = vmul.f32 0.5, %v1058_v36 }
 0x216   : > { %v920_v9 = vsub.f32 %v888_v8, %v904_v6  ;;  %v1145_v11 = vmul.f32 %v1974_v3, %v1125_v52 }
 0x217   : > { %v1060_v12 = vsub.f32 1.5, %v1059_v7 }
 0x218   : > { %v952_v59 = vadd.f32 1e-06, %v920_v9  ;;  %v1406_v57 = vpop.eup %1405  ;;  %v1165_v39 = vadd.f32 %v1981_v53, %v1145_v11 }
 0x219   : > { %v1061_v35 = vmul.f32 %v1404_v41, %v1060_v12  ;;  %v1067_v19 = vmul.f32 %v1406_v57, %v951_v63  ;;  %vm1073_vm2 = vweird.f32 %v1406_v57  ;;  %v800_v28 = vpop.xlane.xlu1 %799 }
 0x21a   : > { %1407 = vrsqrt.f32 %v952_v59  ;;  %1181 = vst [vmem:[%s1988_s17 + $0x48] sm:$0xff] %v1165_v39  ;;  %vm1074_vm4 = vmor %vm1072_vm3, %vm1073_vm2  ;;  %v825_v34 = vmul.f32 %v1947_v1, %v800_v28  ;;  %vm1082_vm6 = vweird.f32 %v952_v59 }
 0x21b   : > { %v1065_v50 = vsel %vm1064_vm1, %v1404_v41, %v1061_v35  ;;  %v1068_v21 = vmul.f32 %v1406_v57, %v1067_v19 }
 0x21c   : > { %v1126_v17 = vmul.f32 %v1065_v50, %v934_v38  ;;  %v905_v58 = vmul.f32 %v825_v34, %v825_v34  ;;  %v937_v19 = vsub.f32 %v1940_v56, %v825_v34 }
 0x21d   : > { %v1069_v23 = vmul.f32 0.5, %v1068_v21 }
 0x21e   : > { %v1146_v22 = vmul.f32 %v1974_v3, %v1126_v17 }
 0x21f   : > { %v802_v24 = vpop.xlane.xlu2 %801  ;;  %v1070_v29 = vsub.f32 1.5, %v1069_v23 }
 0x220   : > { %v1408_v25 = vpop.eup %1407  ;;  %v1166_v27 = vadd.f32 %v1981_v53, %v1146_v22  ;;  %v826_v61 = vmul.f32 %v1947_v1, %v802_v24 }
 0x221   : > { %v1077_v30 = vmul.f32 %v1408_v25, %v952_v59  ;;  %v1071_v40 = vmul.f32 %v1406_v57, %v1070_v29  ;;  %vm1083_vm5 = vweird.f32 %v1408_v25 }
 0x222   : > { %1182 = vst [vmem:[%s1988_s17 + $0x50] sm:$0xff] %v1166_v27  ;;  %vm1084_vm7 = vmor %vm1082_vm6, %vm1083_vm5  ;;  %v906_v4 = vmul.f32 %v826_v61, %v826_v61 }
 0x223   : > { %v1078_v31 = vmul.f32 %v1408_v25, %v1077_v30  ;;  %v1075_v42 = vsel %vm1074_vm4, %v1406_v57, %v1071_v40 }
 0x224   : > { %v1127_v16 = vmul.f32 %v1075_v42, %v935_v15 }
 0x225   : > { %v1079_v37 = vmul.f32 0.5, %v1078_v31 }
 0x226   : > { %v1147_v18 = vmul.f32 %v1974_v3, %v1127_v16 }
 0x227   : > { %v1080_v54 = vsub.f32 1.5, %v1079_v37  ;;  %v871_v26 = vpop.xlane.xlu2 %870  ;;  %v804_v45 = vpop.xlane.xlu0 %803 }
 0x228   : > { %v889_v47 = vmul.f32 %v871_v26, %v1947_v1  ;;  %v827_v51 = vmul.f32 %v1947_v1, %v804_v45  ;;  %v1167_v49 = vadd.f32 %v1981_v53, %v1147_v18 }
 0x229   : > { %v1081_v46 = vmul.f32 %v1408_v25, %v1080_v54  ;;  %v875_v32 = vpop.xlane.xlu1 %874 }
 0x22a   : > { %v921_v33 = vsub.f32 %v889_v47, %v905_v58  ;;  %v907_v44 = vmul.f32 %v827_v51, %v827_v51  ;;  %v891_v20 = vmul.f32 %v875_v32, %v1947_v1  ;;  %1183 = vst [vmem:[%s1988_s17 + $0x58] sm:$0xff] %v1167_v49  ;;  %v939_v23 = vsub.f32 %v1954_v14, %v827_v51 }
 0x22b   : > { %v1085_v41 = vsel %vm1084_vm7, %v1408_v25, %v1081_v46  ;;  %v938_v14 = vsub.f32 %v1944_v62, %v826_v61 }
 0x22c   : > { %v1128_v60 = vmul.f32 %v1085_v41, %v936_v55  ;;  %v953_v10 = vadd.f32 1e-06, %v921_v33  ;;  %v923_v63 = vsub.f32 %v891_v20, %v907_v44 }
 0x22e   : > { %v1148_v2 = vmul.f32 %v1974_v3, %v1128_v60  ;;  %1409 = vrsqrt.f32 %v953_v10  ;;  %v955_v0 = vadd.f32 1e-06, %v923_v63  ;;  %vm1092_vm9 = vweird.f32 %v953_v10 }
 0x22f   : > { %v873_v13 = vpop.xlane.xlu0 %872 }
 0x230   : > { %v1168_v48 = vadd.f32 %v1981_v53, %v1148_v2  ;;  %1411 = vrsqrt.f32 %v955_v0  ;;  %v890_v43 = vmul.f32 %v873_v13, %v1947_v1  ;;  %vm1112_vm12 = vweird.f32 %v955_v0 }
 0x232   : > { %1184 = vst [vmem:[%s1988_s17 + $0x60] sm:$0xff] %v1168_v48  ;;  %v922_v36 = vsub.f32 %v890_v43, %v906_v4 }
 0x234   : > { %v1410_v5 = vpop.eup %1409  ;;  %v954_v6 = vadd.f32 1e-06, %v922_v36 }
 0x235   : > { %v1087_v8 = vmul.f32 %v1410_v5, %v953_v10  ;;  %vm1093_vm8 = vweird.f32 %v1410_v5 }
 0x236   : > { %v1412_v52 = vpop.eup %1411  ;;  %1413 = vrsqrt.f32 %v954_v6  ;;  %vm1094_vm11 = vmor %vm1092_vm9, %vm1093_vm8  ;;  %vm1102_vm15 = vweird.f32 %v954_v6 }
 0x237   : > { %v1088_v7 = vmul.f32 %v1410_v5, %v1087_v8  ;;  %v1107_v9 = vmul.f32 %v1412_v52, %v955_v0  ;;  %vm1113_vm10 = vweird.f32 %v1412_v52 }
 0x238   : > { %vm1114_vm13 = vmor %vm1112_vm12, %vm1113_vm10 }
 0x239   : > { %v1089_v11 = vmul.f32 0.5, %v1088_v7  ;;  %v1108_v12 = vmul.f32 %v1412_v52, %v1107_v9 }
 0x23b   : > { %v1090_v59 = vsub.f32 1.5, %v1089_v11  ;;  %v1109_v57 = vmul.f32 0.5, %v1108_v12 }
 0x23c   : > { %v1414_v39 = vpop.eup %1413 }
 0x23d   : > { %v1091_v35 = vmul.f32 %v1410_v5, %v1090_v59  ;;  %v1110_v38 = vsub.f32 1.5, %v1109_v57  ;;  %v1097_v1 = vmul.f32 %v1414_v39, %v954_v6  ;;  %vm1103_vm14 = vweird.f32 %v1414_v39 }
 0x23e   : > { %vm1104_vm0 = vmor %vm1102_vm15, %vm1103_vm14 }
 0x23f   : > { %v1095_v50 = vsel %vm1094_vm11, %v1410_v5, %v1091_v35  ;;  %v1111_v17 = vmul.f32 %v1412_v52, %v1110_v38  ;;  %v1098_v21 = vmul.f32 %v1414_v39, %v1097_v1 }
 0x240   : > { %v1129_v22 = vmul.f32 %v1095_v50, %v937_v19 }
 0x241   : > { %v1115_v24 = vsel %vm1114_vm13, %v1412_v52, %v1111_v17  ;;  %v1099_v25 = vmul.f32 0.5, %v1098_v21 }
 0x242   : > { %v1149_v27 = vmul.f32 %v1974_v3, %v1129_v22  ;;  %v1131_v29 = vmul.f32 %v1115_v24, %v939_v23 }
 0x243   : > { %v1100_v30 = vsub.f32 1.5, %v1099_v25 }
 0x244   : > { %v1169_v56 = vadd.f32 %v1981_v53, %v1149_v27  ;;  %v1151_v28 = vmul.f32 %v1974_v3, %v1131_v29 }
 0x245   : > { %v1101_v40 = vmul.f32 %v1414_v39, %v1100_v30 }
 0x246   : > { %1185 = vst [vmem:[%s1988_s17 + $0x68] sm:$0xff] %v1169_v56  ;;  %v1171_v15 = vadd.f32 %v1981_v53, %v1151_v28 }
 0x247   : > { %v1105_v31 = vsel %vm1104_vm0, %v1414_v39, %v1101_v40 }
 0x248   : > { %1187 = vst [vmem:[%s1988_s17 + $0x78] sm:$0xff] %v1171_v15  ;;  %v1130_v42 = vmul.f32 %v1105_v31, %v938_v14 }
 0x24a   : > { %v1150_v34 = vmul.f32 %v1974_v3, %v1130_v42 }
 0x24c   : > { %v1170_v16 = vadd.f32 %v1981_v53, %v1150_v34 }
 0x24e   : > { %1186 = vst [vmem:[%s1988_s17 + $0x70] sm:$0xff] %v1170_v16 }
 0x24f   : > { %1442 = shalt.err (!%p1439_p5)
}
 0x250   : > { %s1496_s12 = smov 128   ;;  %s1497_s17 = smov 8  }
 0x251   : > { %1320 = dma.vmem_to_hbm [thread:$0]  (%p1568_p4), %s1202_s21, 2048, %s1204_s29, %s1189_s7, %s1496_s12, %s1496_s12, %s1497_s17  }
 0x252 PF: > { %p1326_p6 = scmp.ge.s32.totalorder %s1493_s23, 2  ;;  %s1218_s16 = sand.u32 1, %s1473_s18  }
 0x253   : > { %s1219_s24 = scalar_lea.sflag [#allocation3], %s1218_s16 }
 0x254   : > { %p1323_p7 = pnand %p1326_p6, %p1575_p8 }
 0x256   : > { %p1324_p9 = pneg %p1323_p7 }
 0x258   : > { %1468 = dma.done.wait (%p1324_p9), %s1219_s24, 2048  }
 0x259   : > { %1470 = vsyncadd (%p1324_p9), %s1219_s24, 4294965248  ;;  %s18_s23 = sadd.s32 1, %s1493_s23   ;;  %s2172_s18 = smov %s1477_s19 }
 0x25a   : > { %p15_p10 = scmp.ge.s32.totalorder %s18_s23, 4   ;;  %s2173_s19 = smov %s1481_s20 }
 0x25b   : > { %s2174_s20 = smov %s1581_s6  ;;  %s2175_s21 = smov %s1489_s22 }
 0x25c   : > { %s2176_s22 = smov %s2178_s26  ;;  %17 = sbr.rel (!%p15_p10) target bundleno = 4 (0x4), region = 89 }
 0x261   :  { %1225 = vsyncpa [#allocation3], 1 }
 0x262   :  { %1227 = vsyncpa [#allocation3 + $0x1], 1 }

</bundles_post_ra>
